<compile_context>
chip_gen: v6e
topology: v6e:2x2x1
jax: 0.10.0
libtpu: 0.0.40
codegen_flags: <defaults>
</compile_context>

<pallas_src>
import jax
import jax.numpy as jnp
from jax.experimental import pallas as pl
from jax.experimental.pallas import tpu as pltpu

B = 8          # batch
D_IMG = 128    # image_embed_dim (small stand-in for 512)
D_TXT = 256    # text_embed_dim  (small stand-in for 768)


def _round_up(x, m):
    return (x + m - 1) // m * m


def _num_tensorcores_per_chip():
    """Best-effort TC-per-chip detection (v7x has 2). Safe fallback = 1."""
    try:
        kind = jax.devices()[0].device_kind.lower()
        if "v7" in kind:
            return 2
    except Exception:
        pass
    return 1


def _sincos(x):
    """sin(x), cos(x) in f32 with a single shared range reduction.

    Quadrant reduction to r in [-pi/4, pi/4] (Cody-Waite 2-term pi/2 split),
    then short Cephes sinf/cosf polynomials + quadrant selects.  Roughly half
    the VALU ops of separate jnp.sin + jnp.cos; error ~1e-7, negligible for
    this module.
    """
    two_over_pi = 0.6366197723675814
    pio2_hi = 1.5707963705062866     # float32(pi/2)
    pio2_lo = -4.371139000186243e-08  # pi/2 - float32(pi/2)

    t = x * two_over_pi
    # round-half-away-from-zero via truncating f32->i32 conversion (no vround
    # dependency); exact quadrant boundaries are indifferent (r = +/- pi/4).
    qi = (t + jnp.where(t >= 0.0, 0.5, -0.5)).astype(jnp.int32)
    q = qi.astype(jnp.float32)
    r = (x - q * pio2_hi) - q * pio2_lo
    r2 = r * r

    # sin(r), cos(r) on [-pi/4, pi/4]
    s = r + r * r2 * (-1.6666654611e-1 + r2 * (8.3321608736e-3
                      + r2 * (-1.9515295891e-4)))
    c = 1.0 + r2 * (-0.5 + r2 * (4.166664568298827e-2
                    + r2 * (-1.388731625493765e-3
                    + r2 * 2.443315711809948e-5)))

    swap = (qi & 1) == 1
    sin_sign = jnp.where((qi & 2) == 0, 1.0, -1.0)
    cos_sign = jnp.where(((qi + 1) & 2) == 0, 1.0, -1.0)
    sin_x = sin_sign * jnp.where(swap, c, s)
    cos_x = cos_sign * jnp.where(swap, s, c)
    return sin_x, cos_x


def _complex_projection_kernel(
    x_img_ref, x_txt_ref, conj_ref,
    bn_img_ref, bn_txt_ref, bias_ref,
    w1i_ref, w2i_ref, w1t_ref, w2t_ref,
    concat_ref, x1_ref, x2_ref, re_ref, im_ref,
):
    f32 = jnp.float32
    bf16 = jnp.bfloat16

    # --- image tower: BN(eval) -> Linear -> Dropout(eval=id) -> ReLU -> Linear
    ui = x_img_ref[...] * bn_img_ref[0:1, :] + bn_img_ref[1:2, :]
    hi = jnp.dot(ui.astype(bf16), w1i_ref[...], preferred_element_type=f32)
    hi = jnp.maximum(hi + bias_ref[0:1, :], 0.0)
    x1 = jnp.dot(hi.astype(bf16), w2i_ref[...], preferred_element_type=f32)
    x1 = x1 + bias_ref[1:2, :]

    # --- text tower: BN(eval) -> Linear -> ReLU -> Linear
    ut = x_txt_ref[...] * bn_txt_ref[0:1, :] + bn_txt_ref[1:2, :]
    ht = jnp.dot(ut.astype(bf16), w1t_ref[...], preferred_element_type=f32)
    ht = jnp.maximum(ht + bias_ref[2:3, :], 0.0)
    x2 = jnp.dot(ht.astype(bf16), w2t_ref[...], preferred_element_type=f32)
    x2 = x2 + bias_ref[3:4, :]

    # --- complex phase modulation (f32 VPU); one shared sin/cos reduction.
    sin_d, cos_d = _sincos(x2)
    conj_b = jnp.broadcast_to(conj_ref[...], x1.shape)   # hoisted lane broadcast
    re_score = x1 * cos_d
    im_score = conj_b * x1 * sin_d

    # --- lane-dense, 128-aligned stores (5 outputs, no wrapper slicing).
    re_ref[...] = re_score
    im_ref[...] = im_score
    x1_ref[...] = x1
    x2_ref[...] = x2
    concat_ref[:, :D_IMG] = re_score
    concat_ref[:, D_IMG:] = im_score


def complex_projection(x_img, x_txt, conjugate, kparams, *, max_block_rows=512):
    """Forward pass of ComplexProjectionModule.

    Returns (concat_x, x1, x2, x0copy, re_score, im_score) with the same
    unsqueeze(1) shapes as the PyTorch module.
    """
    num_samples = x_img.shape[0]
    # CONJUGATE = CONJUGATE[:num_samples]; accept 1-D or (N,1).
    conj = jnp.reshape(conjugate[:num_samples], (num_samples, 1)).astype(jnp.float32)

    # Batch tiling: up to `max_block_rows` rows per grid step on the
    # "parallel" axis.  On multi-TC chips (v7x) make sure the grid has at
    # least num_tc steps so both TensorCores get work at medium batch.
    tb = min(max_block_rows, _round_up(num_samples, 8))
    ntc = _num_tensorcores_per_chip()
    if ntc > 1:
        tb = min(tb, _round_up(-(-num_samples // ntc), 8))
    bp = _round_up(num_samples, tb)

    if bp != num_samples:
        pad = bp - num_samples
        x_img_p = jnp.pad(x_img, ((0, pad), (0, 0)))
        x_txt_p = jnp.pad(x_txt, ((0, pad), (0, 0)))
        conj_p = jnp.pad(conj, ((0, pad), (0, 0)))
    else:
        x_img_p, x_txt_p, conj_p = x_img, x_txt, conj

    f32 = jnp.float32

    outs = pl.pallas_call(
        _complex_projection_kernel,
        out_shape=(
            jax.ShapeDtypeStruct((bp, 2 * D_IMG), f32),   # concat_x
            jax.ShapeDtypeStruct((bp, D_IMG), f32),       # x1
            jax.ShapeDtypeStruct((bp, D_IMG), f32),       # x2
            jax.ShapeDtypeStruct((bp, D_IMG), f32),       # re_score
            jax.ShapeDtypeStruct((bp, D_IMG), f32),       # im_score
        ),
        grid=(bp // tb,),
        in_specs=[
            pl.BlockSpec((tb, D_IMG), lambda i: (i, 0)),       # x_img
            pl.BlockSpec((tb, D_TXT), lambda i: (i, 0)),       # x_txt
            pl.BlockSpec((tb, 1), lambda i: (i, 0)),           # conjugate
            pl.BlockSpec((2, D_IMG), lambda i: (0, 0)),        # BN img [scale; shift]
            pl.BlockSpec((2, D_TXT), lambda i: (0, 0)),        # BN txt [scale; shift]
            pl.BlockSpec((4, D_IMG), lambda i: (0, 0)),        # [b1i; b2i; b1t; b2t]
            pl.BlockSpec((D_IMG, D_IMG), lambda i: (0, 0)),    # w1i (bf16)
            pl.BlockSpec((D_IMG, D_IMG), lambda i: (0, 0)),    # w2i (bf16)
            pl.BlockSpec((D_TXT, D_IMG), lambda i: (0, 0)),    # w1t (bf16)
            pl.BlockSpec((D_IMG, D_IMG), lambda i: (0, 0)),    # w2t (bf16)
        ],
        out_specs=(
            pl.BlockSpec((tb, 2 * D_IMG), lambda i: (i, 0)),
            pl.BlockSpec((tb, D_IMG), lambda i: (i, 0)),
            pl.BlockSpec((tb, D_IMG), lambda i: (i, 0)),
            pl.BlockSpec((tb, D_IMG), lambda i: (i, 0)),
            pl.BlockSpec((tb, D_IMG), lambda i: (i, 0)),
        ),
        compiler_params=pltpu.CompilerParams(
            dimension_semantics=("parallel",)),
    )(
        x_img_p, x_txt_p, conj_p,
        kparams["bn_img"], kparams["bn_txt"], kparams["bias"],
        kparams["w1i"], kparams["w2i"], kparams["w1t"], kparams["w2t"],
    )

    concat_x, x1, x2, re_score, im_score = outs
    if bp != num_samples:
        concat_x = concat_x[:num_samples]
        x1 = x1[:num_samples]
        x2 = x2[:num_samples]
        re_score = re_score[:num_samples]
        im_score = im_score[:num_samples]

    # unsqueeze(1) glue (pure reshapes)
    x0copy = x_img[:, None, :]
    return (
        concat_x,
        x1[:, None, :],
        x2[:, None, :],
        x0copy,
        re_score[:, None, :],
        im_score[:, None, :],
    )


def init_params(key):
    """Deterministic synthetic parameters (f32, per-tower).

    Linear weights are stored as (in, out) so the math is x @ W + b.
    BatchNorm1d (eval mode) is folded: scale = gamma/sqrt(var+eps),
    shift = beta - mean*scale.  1-D vectors are kept as (1, D) rows.
    """
    ks = jax.random.split(key, 16)
    f32 = jnp.float32
    eps = 1e-5

    def bn_fold(kg, kb, km, kv, dim):
        gamma = 1.0 + 0.1 * jax.random.normal(kg, (1, dim), f32)
        beta = 0.1 * jax.random.normal(kb, (1, dim), f32)
        mean = 0.1 * jax.random.normal(km, (1, dim), f32)
        var = 0.5 + jnp.abs(jax.random.normal(kv, (1, dim), f32))
        scale = gamma / jnp.sqrt(var + eps)
        shift = beta - mean * scale
        return scale, shift

    bni_s, bni_b = bn_fold(ks[0], ks[1], ks[2], ks[3], D_IMG)
    bnt_s, bnt_b = bn_fold(ks[4], ks[5], ks[6], ks[7], D_TXT)

    def lin(k, din, dout):
        return 0.05 * jax.random.normal(k, (din, dout), f32)

    return dict(
        bni_s=bni_s, bni_b=bni_b,
        w1i=lin(ks[8], D_IMG, D_IMG), b1i=0.05 * jax.random.normal(ks[9], (1, D_IMG), f32),
        w2i=lin(ks[10], D_IMG, D_IMG), b2i=0.05 * jax.random.normal(ks[11], (1, D_IMG), f32),
        bnt_s=bnt_s, bnt_b=bnt_b,
        w1t=lin(ks[12], D_TXT, D_IMG), b1t=0.05 * jax.random.normal(ks[13], (1, D_IMG), f32),
        w2t=lin(ks[14], D_IMG, D_IMG), b2t=0.05 * jax.random.normal(ks[15], (1, D_IMG), f32),
    )


def pack_params(p):
    """Pack the 12 per-tower tensors into 6 kernel inputs.

    Per-tower weights stay unfused (no structural zeros) and are stored bf16
    (MXU-native, half the DMA bytes).  BN scale/shift and biases are packed
    into small f32 slabs.
    """
    bf16 = jnp.bfloat16
    return dict(
        bn_img=jnp.concatenate([p["bni_s"], p["bni_b"]], axis=0),                     # (2, D_IMG)
        bn_txt=jnp.concatenate([p["bnt_s"], p["bnt_b"]], axis=0),                     # (2, D_TXT)
        bias=jnp.concatenate([p["b1i"], p["b2i"], p["b1t"], p["b2t"]], axis=0),       # (4, D_IMG)
        w1i=p["w1i"].astype(bf16),
        w2i=p["w2i"].astype(bf16),
        w1t=p["w1t"].astype(bf16),
        w2t=p["w2t"].astype(bf16),
    )


def _reference(x_img, x_txt, conjugate, p):
    """Pure-JAX reference mirroring the kernel's bf16-matmul / f32-acc numerics."""
    conj = jnp.reshape(conjugate[: x_img.shape[0]], (x_img.shape[0], 1))
    bf16 = jnp.bfloat16

    def mm(a, w):
        return jnp.dot(a.astype(bf16), w.astype(bf16),
                       preferred_element_type=jnp.float32)

    h = x_img * p["bni_s"] + p["bni_b"]
    h = jnp.maximum(mm(h, p["w1i"]) + p["b1i"], 0.0)
    x1 = mm(h, p["w2i"]) + p["b2i"]
    t = x_txt * p["bnt_s"] + p["bnt_b"]
    t = jnp.maximum(mm(t, p["w1t"]) + p["b1t"], 0.0)
    x2 = mm(t, p["w2t"]) + p["b2t"]
    re = x1 * jnp.cos(x2)
    im = conj * x1 * jnp.sin(x2)
    return jnp.concatenate([re, im], axis=1), x1, x2, re, im


if __name__ == "__main__":
    key = jax.random.PRNGKey(0)
    k_img, k_txt, k_par = jax.random.split(key, 3)

    x_img = jax.random.normal(k_img, (B, D_IMG), jnp.float32)     # x[0]
    x_txt = jax.random.normal(k_txt, (B, D_TXT), jnp.float32)     # x[1]
    conjugate = -jnp.ones((B + 4, 1), jnp.float32)                # x[2] (longer, gets sliced)
    params = init_params(k_par)
    kparams = pack_params(params)

    out = complex_projection(x_img, x_txt, conjugate, kparams)
    out = jax.block_until_ready(out)

    concat_x, x1, x2, x0copy, re_s, im_s = out
    assert concat_x.shape == (B, 2 * D_IMG)
    assert x1.shape == (B, 1, D_IMG) and x2.shape == (B, 1, D_IMG)
    assert x0copy.shape == (B, 1, D_IMG)
    assert re_s.shape == (B, 1, D_IMG) and im_s.shape == (B, 1, D_IMG)

    ref_cat, ref_x1, ref_x2, ref_re, ref_im = _reference(x_img, x_txt, conjugate, params)
    tol = dict(rtol=1e-2, atol=1e-2)   # bf16 matmul path + poly sin/cos (~1e-7)
    assert jnp.allclose(concat_x, ref_cat, **tol)
    assert jnp.allclose(x1[:, 0], ref_x1, **tol)
    assert jnp.allclose(x2[:, 0], ref_x2, **tol)
    assert jnp.allclose(re_s[:, 0], ref_re, **tol)
    assert jnp.allclose(im_s[:, 0], ref_im, **tol)
    assert jnp.allclose(x0copy[:, 0], x_img)

    print("KERNEL_OK")
</pallas_src>

<mosaic_0001>
module attributes {stable_mosaic.version = 11 : i64} {
  func.func @_complex_projection_kernel(%arg0: i32, %arg1: memref<8x128xf32, #tpu.memory_space<vmem>>, %arg2: memref<8x256xf32, #tpu.memory_space<vmem>>, %arg3: memref<8x1xf32, #tpu.memory_space<vmem>>, %arg4: memref<2x128xf32, #tpu.memory_space<vmem>>, %arg5: memref<2x256xf32, #tpu.memory_space<vmem>>, %arg6: memref<4x128xf32, #tpu.memory_space<vmem>>, %arg7: memref<128x128xbf16, #tpu.memory_space<vmem>>, %arg8: memref<128x128xbf16, #tpu.memory_space<vmem>>, %arg9: memref<256x128xbf16, #tpu.memory_space<vmem>>, %arg10: memref<128x128xbf16, #tpu.memory_space<vmem>>, %arg11: memref<8x256xf32, #tpu.memory_space<vmem>>, %arg12: memref<8x128xf32, #tpu.memory_space<vmem>>, %arg13: memref<8x128xf32, #tpu.memory_space<vmem>>, %arg14: memref<8x128xf32, #tpu.memory_space<vmem>>, %arg15: memref<8x128xf32, #tpu.memory_space<vmem>>) attributes {dimension_semantics = [#tpu.dimension_semantics<parallel>], iteration_bounds = array<i64: 1>, scalar_prefetch = 0 : i64, scratch_operands = 0 : i64, tpu.core_type = #tpu.core_type<tc>, window_params = [{transform_indices = @transform_0, window_bounds = array<i64: 8, 128>}, {transform_indices = @transform_1, window_bounds = array<i64: 8, 256>}, {transform_indices = @transform_2, window_bounds = array<i64: 8, 1>}, {pipeline_mode = #tpu.pipeline_mode<synchronous>, transform_indices = @transform_3, window_bounds = array<i64: 2, 128>}, {pipeline_mode = #tpu.pipeline_mode<synchronous>, transform_indices = @transform_4, window_bounds = array<i64: 2, 256>}, {pipeline_mode = #tpu.pipeline_mode<synchronous>, transform_indices = @transform_5, window_bounds = array<i64: 4, 128>}, {pipeline_mode = #tpu.pipeline_mode<synchronous>, transform_indices = @transform_6, window_bounds = array<i64: 128, 128>}, {pipeline_mode = #tpu.pipeline_mode<synchronous>, transform_indices = @transform_7, window_bounds = array<i64: 128, 128>}, {pipeline_mode = #tpu.pipeline_mode<synchronous>, transform_indices = @transform_8, window_bounds = array<i64: 256, 128>}, {pipeline_mode = #tpu.pipeline_mode<synchronous>, transform_indices = @transform_9, window_bounds = array<i64: 128, 128>}, {transform_indices = @transform_10, window_bounds = array<i64: 8, 256>}, {transform_indices = @transform_11, window_bounds = array<i64: 8, 128>}, {transform_indices = @transform_12, window_bounds = array<i64: 8, 128>}, {transform_indices = @transform_13, window_bounds = array<i64: 8, 128>}, {transform_indices = @transform_14, window_bounds = array<i64: 8, 128>}]} {
    %c0 = arith.constant 0 : index
    %c0_0 = arith.constant 0 : index
    %0 = vector.load %arg1[%c0, %c0_0] : memref<8x128xf32, #tpu.memory_space<vmem>>, vector<8x128xf32>
    %c0_1 = arith.constant 0 : index
    %c0_2 = arith.constant 0 : index
    %1 = vector.load %arg4[%c0_1, %c0_2] : memref<2x128xf32, #tpu.memory_space<vmem>>, vector<1x128xf32>
    %2 = vector.broadcast %1 : vector<1x128xf32> to vector<8x128xf32>
    %3 = arith.mulf %0, %2 : vector<8x128xf32>
    %c1 = arith.constant 1 : index
    %c0_3 = arith.constant 0 : index
    %4 = vector.load %arg4[%c1, %c0_3] : memref<2x128xf32, #tpu.memory_space<vmem>>, vector<1x128xf32>
    %5 = vector.broadcast %4 : vector<1x128xf32> to vector<8x128xf32>
    %6 = arith.addf %3, %5 : vector<8x128xf32>
    %7 = arith.truncf %6 : vector<8x128xf32> to vector<8x128xbf16>
    %c0_4 = arith.constant 0 : index
    %c0_5 = arith.constant 0 : index
    %8 = vector.load %arg7[%c0_4, %c0_5] : memref<128x128xbf16, #tpu.memory_space<vmem>>, vector<128x128xbf16>
    %cst = arith.constant dense<0.000000e+00> : vector<8x128xf32>
    %9 = tpu.matmul %7, %8, %cst {dimension_numbers = #tpu.dot_dimension_numbers<[1], [0], [0], [1], [0, 0, 1, 1], [], []>} : vector<8x128xbf16>, vector<128x128xbf16>, vector<8x128xf32> -> vector<8x128xf32>
    %c0_6 = arith.constant 0 : index
    %c0_7 = arith.constant 0 : index
    %10 = vector.load %arg6[%c0_6, %c0_7] : memref<4x128xf32, #tpu.memory_space<vmem>>, vector<1x128xf32>
    %11 = vector.broadcast %10 : vector<1x128xf32> to vector<8x128xf32>
    %12 = arith.addf %9, %11 : vector<8x128xf32>
    %cst_8 = arith.constant 0.000000e+00 : f32
    %13 = vector.broadcast %cst_8 : f32 to vector<8x128xf32>
    %14 = arith.maximumf %12, %13 : vector<8x128xf32>
    %15 = arith.truncf %14 : vector<8x128xf32> to vector<8x128xbf16>
    %c0_9 = arith.constant 0 : index
    %c0_10 = arith.constant 0 : index
    %16 = vector.load %arg8[%c0_9, %c0_10] : memref<128x128xbf16, #tpu.memory_space<vmem>>, vector<128x128xbf16>
    %cst_11 = arith.constant dense<0.000000e+00> : vector<8x128xf32>
    %17 = tpu.matmul %15, %16, %cst_11 {dimension_numbers = #tpu.dot_dimension_numbers<[1], [0], [0], [1], [0, 0, 1, 1], [], []>} : vector<8x128xbf16>, vector<128x128xbf16>, vector<8x128xf32> -> vector<8x128xf32>
    %c1_12 = arith.constant 1 : index
    %c0_13 = arith.constant 0 : index
    %18 = vector.load %arg6[%c1_12, %c0_13] : memref<4x128xf32, #tpu.memory_space<vmem>>, vector<1x128xf32>
    %19 = vector.broadcast %18 : vector<1x128xf32> to vector<8x128xf32>
    %20 = arith.addf %17, %19 : vector<8x128xf32>
    %c0_14 = arith.constant 0 : index
    %c0_15 = arith.constant 0 : index
    %21 = vector.load %arg2[%c0_14, %c0_15] : memref<8x256xf32, #tpu.memory_space<vmem>>, vector<8x256xf32>
    %c0_16 = arith.constant 0 : index
    %c0_17 = arith.constant 0 : index
    %22 = vector.load %arg5[%c0_16, %c0_17] : memref<2x256xf32, #tpu.memory_space<vmem>>, vector<1x256xf32>
    %23 = vector.broadcast %22 : vector<1x256xf32> to vector<8x256xf32>
    %24 = arith.mulf %21, %23 : vector<8x256xf32>
    %c1_18 = arith.constant 1 : index
    %c0_19 = arith.constant 0 : index
    %25 = vector.load %arg5[%c1_18, %c0_19] : memref<2x256xf32, #tpu.memory_space<vmem>>, vector<1x256xf32>
    %26 = vector.broadcast %25 : vector<1x256xf32> to vector<8x256xf32>
    %27 = arith.addf %24, %26 : vector<8x256xf32>
    %28 = arith.truncf %27 : vector<8x256xf32> to vector<8x256xbf16>
    %c0_20 = arith.constant 0 : index
    %c0_21 = arith.constant 0 : index
    %29 = vector.load %arg9[%c0_20, %c0_21] : memref<256x128xbf16, #tpu.memory_space<vmem>>, vector<256x128xbf16>
    %cst_22 = arith.constant dense<0.000000e+00> : vector<8x128xf32>
    %30 = tpu.matmul %28, %29, %cst_22 {dimension_numbers = #tpu.dot_dimension_numbers<[1], [0], [0], [1], [0, 0, 1, 1], [], []>} : vector<8x256xbf16>, vector<256x128xbf16>, vector<8x128xf32> -> vector<8x128xf32>
    %c2 = arith.constant 2 : index
    %c0_23 = arith.constant 0 : index
    %31 = vector.load %arg6[%c2, %c0_23] : memref<4x128xf32, #tpu.memory_space<vmem>>, vector<1x128xf32>
    %32 = vector.broadcast %31 : vector<1x128xf32> to vector<8x128xf32>
    %33 = arith.addf %30, %32 : vector<8x128xf32>
    %cst_24 = arith.constant 0.000000e+00 : f32
    %34 = vector.broadcast %cst_24 : f32 to vector<8x128xf32>
    %35 = arith.maximumf %33, %34 : vector<8x128xf32>
    %36 = arith.truncf %35 : vector<8x128xf32> to vector<8x128xbf16>
    %c0_25 = arith.constant 0 : index
    %c0_26 = arith.constant 0 : index
    %37 = vector.load %arg10[%c0_25, %c0_26] : memref<128x128xbf16, #tpu.memory_space<vmem>>, vector<128x128xbf16>
    %cst_27 = arith.constant dense<0.000000e+00> : vector<8x128xf32>
    %38 = tpu.matmul %36, %37, %cst_27 {dimension_numbers = #tpu.dot_dimension_numbers<[1], [0], [0], [1], [0, 0, 1, 1], [], []>} : vector<8x128xbf16>, vector<128x128xbf16>, vector<8x128xf32> -> vector<8x128xf32>
    %c3 = arith.constant 3 : index
    %c0_28 = arith.constant 0 : index
    %39 = vector.load %arg6[%c3, %c0_28] : memref<4x128xf32, #tpu.memory_space<vmem>>, vector<1x128xf32>
    %40 = vector.broadcast %39 : vector<1x128xf32> to vector<8x128xf32>
    %41 = arith.addf %38, %40 : vector<8x128xf32>
    %cst_29 = arith.constant 0.636619746 : f32
    %42 = vector.broadcast %cst_29 : f32 to vector<8x128xf32>
    %43 = arith.mulf %41, %42 : vector<8x128xf32>
    %cst_30 = arith.constant 0.000000e+00 : f32
    %44 = vector.broadcast %cst_30 : f32 to vector<8x128xf32>
    %45 = arith.cmpf oge, %43, %44 : vector<8x128xf32>
    %cst_31 = arith.constant 5.000000e-01 : f32
    %cst_32 = arith.constant -5.000000e-01 : f32
    %46 = vector.broadcast %cst_31 : f32 to vector<8x128xf32>
    %47 = vector.broadcast %cst_32 : f32 to vector<8x128xf32>
    %48 = arith.select %45, %46, %47 : vector<8x128xi1>, vector<8x128xf32>
    %49 = arith.addf %43, %48 : vector<8x128xf32>
    %50 = arith.fptosi %49 : vector<8x128xf32> to vector<8x128xi32>
    %51 = arith.sitofp %50 : vector<8x128xi32> to vector<8x128xf32>
    %cst_33 = arith.constant 1.57079637 : f32
    %52 = vector.broadcast %cst_33 : f32 to vector<8x128xf32>
    %53 = arith.mulf %51, %52 : vector<8x128xf32>
    %54 = arith.subf %41, %53 : vector<8x128xf32>
    %cst_34 = arith.constant -4.37113883E-8 : f32
    %55 = vector.broadcast %cst_34 : f32 to vector<8x128xf32>
    %56 = arith.mulf %51, %55 : vector<8x128xf32>
    %57 = arith.subf %54, %56 : vector<8x128xf32>
    %58 = arith.mulf %57, %57 : vector<8x128xf32>
    %59 = arith.mulf %57, %58 : vector<8x128xf32>
    %cst_35 = arith.constant -1.95152956E-4 : f32
    %60 = vector.broadcast %cst_35 : f32 to vector<8x128xf32>
    %61 = arith.mulf %58, %60 : vector<8x128xf32>
    %cst_36 = arith.constant 0.00833216123 : f32
    %62 = vector.broadcast %cst_36 : f32 to vector<8x128xf32>
    %63 = arith.addf %62, %61 : vector<8x128xf32>
    %64 = arith.mulf %58, %63 : vector<8x128xf32>
    %cst_37 = arith.constant -0.166666552 : f32
    %65 = vector.broadcast %cst_37 : f32 to vector<8x128xf32>
    %66 = arith.addf %65, %64 : vector<8x128xf32>
    %67 = arith.mulf %59, %66 : vector<8x128xf32>
    %68 = arith.addf %57, %67 : vector<8x128xf32>
    %cst_38 = arith.constant 2.44331568E-5 : f32
    %69 = vector.broadcast %cst_38 : f32 to vector<8x128xf32>
    %70 = arith.mulf %58, %69 : vector<8x128xf32>
    %cst_39 = arith.constant -0.00138873165 : f32
    %71 = vector.broadcast %cst_39 : f32 to vector<8x128xf32>
    %72 = arith.addf %71, %70 : vector<8x128xf32>
    %73 = arith.mulf %58, %72 : vector<8x128xf32>
    %cst_40 = arith.constant 0.0416666456 : f32
    %74 = vector.broadcast %cst_40 : f32 to vector<8x128xf32>
    %75 = arith.addf %74, %73 : vector<8x128xf32>
    %76 = arith.mulf %58, %75 : vector<8x128xf32>
    %cst_41 = arith.constant -5.000000e-01 : f32
    %77 = vector.broadcast %cst_41 : f32 to vector<8x128xf32>
    %78 = arith.addf %77, %76 : vector<8x128xf32>
    %79 = arith.mulf %58, %78 : vector<8x128xf32>
    %cst_42 = arith.constant 1.000000e+00 : f32
    %80 = vector.broadcast %cst_42 : f32 to vector<8x128xf32>
    %81 = arith.addf %80, %79 : vector<8x128xf32>
    %c1_i32 = arith.constant 1 : i32
    %82 = vector.broadcast %c1_i32 : i32 to vector<8x128xi32>
    %83 = arith.andi %50, %82 : vector<8x128xi32>
    %c1_i32_43 = arith.constant 1 : i32
    %84 = vector.broadcast %c1_i32_43 : i32 to vector<8x128xi32>
    %85 = arith.cmpi eq, %83, %84 : vector<8x128xi32>
    %c2_i32 = arith.constant 2 : i32
    %86 = vector.broadcast %c2_i32 : i32 to vector<8x128xi32>
    %87 = arith.andi %50, %86 : vector<8x128xi32>
    %c0_i32 = arith.constant 0 : i32
    %88 = vector.broadcast %c0_i32 : i32 to vector<8x128xi32>
    %89 = arith.cmpi eq, %87, %88 : vector<8x128xi32>
    %cst_44 = arith.constant 1.000000e+00 : f32
    %cst_45 = arith.constant -1.000000e+00 : f32
    %90 = vector.broadcast %cst_44 : f32 to vector<8x128xf32>
    %91 = vector.broadcast %cst_45 : f32 to vector<8x128xf32>
    %92 = arith.select %89, %90, %91 : vector<8x128xi1>, vector<8x128xf32>
    %c1_i32_46 = arith.constant 1 : i32
    %93 = vector.broadcast %c1_i32_46 : i32 to vector<8x128xi32>
    %94 = arith.addi %50, %93 : vector<8x128xi32>
    %c2_i32_47 = arith.constant 2 : i32
    %95 = vector.broadcast %c2_i32_47 : i32 to vector<8x128xi32>
    %96 = arith.andi %94, %95 : vector<8x128xi32>
    %c0_i32_48 = arith.constant 0 : i32
    %97 = vector.broadcast %c0_i32_48 : i32 to vector<8x128xi32>
    %98 = arith.cmpi eq, %96, %97 : vector<8x128xi32>
    %cst_49 = arith.constant 1.000000e+00 : f32
    %cst_50 = arith.constant -1.000000e+00 : f32
    %99 = vector.broadcast %cst_49 : f32 to vector<8x128xf32>
    %100 = vector.broadcast %cst_50 : f32 to vector<8x128xf32>
    %101 = arith.select %98, %99, %100 : vector<8x128xi1>, vector<8x128xf32>
    %102 = arith.select %85, %81, %68 : vector<8x128xi1>, vector<8x128xf32>
    %103 = arith.mulf %92, %102 : vector<8x128xf32>
    %104 = arith.select %85, %68, %81 : vector<8x128xi1>, vector<8x128xf32>
    %105 = arith.mulf %101, %104 : vector<8x128xf32>
    %c0_51 = arith.constant 0 : index
    %c0_52 = arith.constant 0 : index
    %106 = vector.load %arg3[%c0_51, %c0_52] : memref<8x1xf32, #tpu.memory_space<vmem>>, vector<8x1xf32>
    %107 = vector.shape_cast %106 : vector<8x1xf32> to vector<8x1xf32>
    %108 = vector.broadcast %107 : vector<8x1xf32> to vector<8x128xf32>
    %109 = arith.mulf %20, %105 : vector<8x128xf32>
    %110 = arith.mulf %108, %20 : vector<8x128xf32>
    %111 = arith.mulf %110, %103 : vector<8x128xf32>
    %c0_53 = arith.constant 0 : index
    %c0_54 = arith.constant 0 : index
    %112 = vector.load %arg14[%c0_53, %c0_54] : memref<8x128xf32, #tpu.memory_space<vmem>>, vector<8x128xf32>
    tpu.vector_store %arg14[%c0_53, %c0_54], %109 {strides = array<i32>} : memref<8x128xf32, #tpu.memory_space<vmem>>, vector<8x128xf32>,
    %c0_55 = arith.constant 0 : index
    %c0_56 = arith.constant 0 : index
    %113 = vector.load %arg15[%c0_55, %c0_56] : memref<8x128xf32, #tpu.memory_space<vmem>>, vector<8x128xf32>
    tpu.vector_store %arg15[%c0_55, %c0_56], %111 {strides = array<i32>} : memref<8x128xf32, #tpu.memory_space<vmem>>, vector<8x128xf32>,
    %c0_57 = arith.constant 0 : index
    %c0_58 = arith.constant 0 : index
    %114 = vector.load %arg12[%c0_57, %c0_58] : memref<8x128xf32, #tpu.memory_space<vmem>>, vector<8x128xf32>
    tpu.vector_store %arg12[%c0_57, %c0_58], %20 {strides = array<i32>} : memref<8x128xf32, #tpu.memory_space<vmem>>, vector<8x128xf32>,
    %c0_59 = arith.constant 0 : index
    %c0_60 = arith.constant 0 : index
    %115 = vector.load %arg13[%c0_59, %c0_60] : memref<8x128xf32, #tpu.memory_space<vmem>>, vector<8x128xf32>
    tpu.vector_store %arg13[%c0_59, %c0_60], %41 {strides = array<i32>} : memref<8x128xf32, #tpu.memory_space<vmem>>, vector<8x128xf32>,
    %c0_61 = arith.constant 0 : index
    %c0_62 = arith.constant 0 : index
    %116 = vector.load %arg11[%c0_61, %c0_62] : memref<8x256xf32, #tpu.memory_space<vmem>>, vector<8x128xf32>
    tpu.vector_store %arg11[%c0_61, %c0_62], %109 {strides = array<i32>} : memref<8x256xf32, #tpu.memory_space<vmem>>, vector<8x128xf32>,
    %c0_63 = arith.constant 0 : index
    %c128 = arith.constant 128 : index
    %117 = vector.load %arg11[%c0_63, %c128] : memref<8x256xf32, #tpu.memory_space<vmem>>, vector<8x128xf32>
    tpu.vector_store %arg11[%c0_63, %c128], %111 {strides = array<i32>} : memref<8x256xf32, #tpu.memory_space<vmem>>, vector<8x128xf32>,
    return
  }
  func.func @transform_0(%arg0: i32) -> (i32, i32) {
    %c0_i32 = arith.constant 0 : i32
    %c0_i32_0 = arith.constant 0 : i32
    return %arg0, %c0_i32 : i32, i32
  }
  func.func @transform_1(%arg0: i32) -> (i32, i32) {
    %c0_i32 = arith.constant 0 : i32
    %c0_i32_0 = arith.constant 0 : i32
    return %arg0, %c0_i32 : i32, i32
  }
  func.func @transform_2(%arg0: i32) -> (i32, i32) {
    %c0_i32 = arith.constant 0 : i32
    %c0_i32_0 = arith.constant 0 : i32
    return %arg0, %c0_i32 : i32, i32
  }
  func.func @transform_3(%arg0: i32) -> (i32, i32) {
    %c0_i32 = arith.constant 0 : i32
    %c0_i32_0 = arith.constant 0 : i32
    %c0_i32_1 = arith.constant 0 : i32
    return %c0_i32, %c0_i32_0 : i32, i32
  }
  func.func @transform_4(%arg0: i32) -> (i32, i32) {
    %c0_i32 = arith.constant 0 : i32
    %c0_i32_0 = arith.constant 0 : i32
    %c0_i32_1 = arith.constant 0 : i32
    return %c0_i32, %c0_i32_0 : i32, i32
  }
  func.func @transform_5(%arg0: i32) -> (i32, i32) {
    %c0_i32 = arith.constant 0 : i32
    %c0_i32_0 = arith.constant 0 : i32
    %c0_i32_1 = arith.constant 0 : i32
    return %c0_i32, %c0_i32_0 : i32, i32
  }
  func.func @transform_6(%arg0: i32) -> (i32, i32) {
    %c0_i32 = arith.constant 0 : i32
    %c0_i32_0 = arith.constant 0 : i32
    %c0_i32_1 = arith.constant 0 : i32
    return %c0_i32, %c0_i32_0 : i32, i32
  }
  func.func @transform_7(%arg0: i32) -> (i32, i32) {
    %c0_i32 = arith.constant 0 : i32
    %c0_i32_0 = arith.constant 0 : i32
    %c0_i32_1 = arith.constant 0 : i32
    return %c0_i32, %c0_i32_0 : i32, i32
  }
  func.func @transform_8(%arg0: i32) -> (i32, i32) {
    %c0_i32 = arith.constant 0 : i32
    %c0_i32_0 = arith.constant 0 : i32
    %c0_i32_1 = arith.constant 0 : i32
    return %c0_i32, %c0_i32_0 : i32, i32
  }
  func.func @transform_9(%arg0: i32) -> (i32, i32) {
    %c0_i32 = arith.constant 0 : i32
    %c0_i32_0 = arith.constant 0 : i32
    %c0_i32_1 = arith.constant 0 : i32
    return %c0_i32, %c0_i32_0 : i32, i32
  }
  func.func @transform_10(%arg0: i32) -> (i32, i32) {
    %c0_i32 = arith.constant 0 : i32
    %c0_i32_0 = arith.constant 0 : i32
    return %arg0, %c0_i32 : i32, i32
  }
  func.func @transform_11(%arg0: i32) -> (i32, i32) {
    %c0_i32 = arith.constant 0 : i32
    %c0_i32_0 = arith.constant 0 : i32
    return %arg0, %c0_i32 : i32, i32
  }
  func.func @transform_12(%arg0: i32) -> (i32, i32) {
    %c0_i32 = arith.constant 0 : i32
    %c0_i32_0 = arith.constant 0 : i32
    return %arg0, %c0_i32 : i32, i32
  }
  func.func @transform_13(%arg0: i32) -> (i32, i32) {
    %c0_i32 = arith.constant 0 : i32
    %c0_i32_0 = arith.constant 0 : i32
    return %arg0, %c0_i32 : i32, i32
  }
  func.func @transform_14(%arg0: i32) -> (i32, i32) {
    %c0_i32 = arith.constant 0 : i32
    %c0_i32_0 = arith.constant 0 : i32
    return %arg0, %c0_i32 : i32, i32
  }
}

</mosaic_0001>

<bundles_post_ra>
// kernel: tpu_custom_call.1
= control target key start
LH: loop header
LB: loop body
LE: loop exit
PB: predicated region body
PF: predicated region fallthrough
CT: control target
= control target key end

     0   :  { %20 = vsyncpa [#allocation3], 0  ;;  %s1451_s0 = inlined_call_operand.vmem [shape: f32[8,128], index: 0, kind: input, shape index: {}]   ;;  %s1452_s1 = inlined_call_operand.hbm [shape: f32[8,256], index: 1, kind: input, shape index: {}]   ;;  %s1453_s2 = inlined_call_operand.vmem [shape: f32[8,1], index: 2, kind: input, shape index: {}]   ;;  %s1454_s3 = inlined_call_operand.hbm [shape: f32[2,128], index: 3, kind: input, shape index: {}]   ;;  %s1455_s4 = inlined_call_operand.vmem [shape: f32[2,256], index: 4, kind: input, shape index: {}]   ;;  %s1456_s5 = inlined_call_operand.vmem [shape: f32[4,128], index: 5, kind: input, shape index: {}]   ;;  %s1457_s6 = inlined_call_operand.hbm [shape: bf16[128,128], index: 6, kind: input, shape index: {}]   ;;  %s1458_s7 = inlined_call_operand.hbm [shape: bf16[128,128], index: 7, kind: input, shape index: {}]   ;;  %s1459_s8 = inlined_call_operand.hbm [shape: bf16[256,128], index: 8, kind: input, shape index: {}]   ;;  %s1460_s9 = inlined_call_operand.hbm [shape: bf16[128,128], index: 9, kind: input, shape index: {}]   ;;  %s1461_s10 = inlined_call_operand.hbm [shape: f32[8,256], index: 10, kind: output, shape index: {0}]   ;;  %s1462_s11 = inlined_call_operand.hbm [shape: f32[8,128], index: 11, kind: output, shape index: {1}]   ;;  %s1463_s12 = inlined_call_operand.hbm [shape: f32[8,128], index: 12, kind: output, shape index: {2}]   ;;  %s1464_s13 = inlined_call_operand.hbm [shape: f32[8,128], index: 13, kind: output, shape index: {3}]   ;;  %s1465_s14 = inlined_call_operand.hbm [shape: f32[8,128], index: 14, kind: output, shape index: {4}]  }
   0x1   :  { %21 = vsyncpa [#allocation6], 0 }
   0x2   :  { %22 = vsyncpa [#allocation9], 0 }
   0x3   :  { %23 = vsyncpa [#allocation12], 0 }
   0x4   :  { %24 = vsyncpa [#allocation4], 0 }
   0x5   :  { %25 = vsyncpa [#allocation15], 0 }
   0x6   :  { %26 = vsyncpa [#allocation18], 0  ;;  %s1250_s29 = smov [#allocation5]  }
   0x7   :  { %s47_s30 = sshll.u32 %s1250_s29, 4  ;;  %s48_s30 = int_to_ptr.vmem [resolvable:$true] %s47_s30 }
   0x8   :  { %s1024_s15 = scalar_lea.vmem %s48_s30, 32  ;;  %p1029_p1 = scmp.lt.s32.totalorder %s48_s30, %s48_s30 }
   0x9   :  { %p1025_p0 = scmp.ne.s32.totalorder %s48_s30, %s1024_s15  ;;  %p1030_p2 = scmp.lt.s32.totalorder %s1024_s15, %s1024_s15 }
   0xb   :  { %p1031_p3 = por %p1030_p2, %p1029_p1 }
   0xd   :  { %p1032_p4 = pnand %p1031_p3, %p1025_p0 }
   0xf   :  { %1035 = shalt.err (!%p1032_p4)
}
  0x10   :  { %50 = dma.hbm_to_vmem [thread:$0]  %s1454_s3, 32, %s48_s30, [#allocation6]  }
  0x11   :  { %s1251_s18 = smov [#allocation8]   ;;  %s1252_s20 = smov [#allocation2]  }
  0x12   :  { %s72_s19 = sshll.u32 %s1251_s18, 4  ;;  %s35_s21 = sshll.u32 %s1252_s20, 4  ;;  %s73_s19 = int_to_ptr.vmem [resolvable:$true] %s72_s19  ;;  %s36_s21 = int_to_ptr.vmem [resolvable:$true] %s35_s21 }
  0x13   :  { %s1044_s22 = scalar_lea.vmem %s73_s19, 1024  ;;  %p1049_p6 = scmp.lt.s32.totalorder %s73_s19, %s73_s19 }
  0x14   :  { %p1045_p5 = scmp.ne.s32.totalorder %s73_s19, %s1044_s22  ;;  %p1050_p7 = scmp.lt.s32.totalorder %s1044_s22, %s1044_s22 }
  0x16   :  { %p1051_p8 = por %p1050_p7, %p1049_p6 }
  0x18   :  { %p1052_p9 = pnand %p1051_p8, %p1045_p5 }
  0x1a   :  { %1055 = shalt.err (!%p1052_p9)
}
  0x1b   :  { %s1253_s23 = smov 64   ;;  %s1254_s24 = smov 4  }
  0x1c   :  { %78 = dma.hbm_to_vmem [thread:$0]  %s1458_s7, 1024, %s73_s19, [#allocation9], %s1253_s23, %s1253_s23, %s1254_s24  }
  0x1d   :  { %s1064_s3 = scalar_lea.vmem %s36_s21, 256  ;;  %p1069_p11 = scmp.lt.s32.totalorder %s36_s21, %s36_s21 }
  0x1e   :  { %p1065_p10 = scmp.ne.s32.totalorder %s36_s21, %s1064_s3  ;;  %p1070_p12 = scmp.lt.s32.totalorder %s1064_s3, %s1064_s3 }
  0x20   :  { %p1071_p13 = por %p1070_p12, %p1069_p11 }
  0x22   :  { %p1072_p0 = pnand %p1071_p13, %p1065_p10 }
  0x24   :  { %1075 = shalt.err (!%p1072_p0)
}
  0x25   :  { %38 = dma.hbm_to_vmem [thread:$0]  %s1452_s1, 256, %s36_s21, [#allocation3]  }
  0x26   :  { %s1255_s29 = smov [#allocation7]   ;;  %s1256_s15 = smov [#allocation10]  }
  0x27   :  { %s60_s30 = sshll.u32 %s1255_s29, 4  ;;  %s84_s16 = sshll.u32 %s1256_s15, 4  ;;  %s61_s30 = int_to_ptr.vmem [resolvable:$true] %s60_s30  ;;  %s85_s16 = int_to_ptr.vmem [resolvable:$true] %s84_s16 }
  0x28   :  { %s1084_s17 = scalar_lea.vmem %s61_s30, 1024  ;;  %p1089_p2 = scmp.lt.s32.totalorder %s61_s30, %s61_s30 }
  0x29   :  { %p1085_p1 = scmp.ne.s32.totalorder %s61_s30, %s1084_s17  ;;  %p1090_p3 = scmp.lt.s32.totalorder %s1084_s17, %s1084_s17 }
  0x2b   :  { %p1091_p4 = por %p1090_p3, %p1089_p2 }
  0x2d   :  { %p1092_p5 = pnand %p1091_p4, %p1085_p1 }
  0x2f   :  { %1095 = shalt.err (!%p1092_p5)
}
  0x30   :  { %66 = dma.hbm_to_vmem [thread:$0]  %s1457_s6, 1024, %s61_s30, [#allocation6], %s1253_s23, %s1253_s23, %s1254_s24  }
  0x31   :  { %s1104_s1 = scalar_lea.vmem %s85_s16, 2048  ;;  %p1109_p7 = scmp.lt.s32.totalorder %s85_s16, %s85_s16 }
  0x32   :  { %p1105_p6 = scmp.ne.s32.totalorder %s85_s16, %s1104_s1  ;;  %p1110_p8 = scmp.lt.s32.totalorder %s1104_s1, %s1104_s1 }
  0x34   :  { %p1111_p9 = por %p1110_p8, %p1109_p7 }
  0x36   :  { %p1112_p10 = pnand %p1111_p9, %p1105_p6 }
  0x38   :  { %1115 = shalt.err (!%p1112_p10)
}
  0x39   :  { %90 = dma.hbm_to_vmem [thread:$0]  %s1459_s8, 2048, %s85_s16, [#allocation9], %s1253_s23, %s1253_s23, %s1254_s24  }
  0x3a   :  { %s1257_s21 = smov [#allocation11]  }
  0x3b   :  { %s96_s22 = sshll.u32 %s1257_s21, 4  ;;  %s97_s22 = int_to_ptr.vmem [resolvable:$true] %s96_s22 }
  0x3c   :  { %s1124_s25 = scalar_lea.vmem %s97_s22, 1024  ;;  %p1129_p12 = scmp.lt.s32.totalorder %s97_s22, %s97_s22 }
  0x3d   :  { %p1125_p11 = scmp.ne.s32.totalorder %s97_s22, %s1124_s25  ;;  %p1130_p13 = scmp.lt.s32.totalorder %s1124_s25, %s1124_s25 }
  0x3f   :  { %p1131_p0 = por %p1130_p13, %p1129_p12 }
  0x41   :  { %p1132_p1 = pnand %p1131_p0, %p1125_p11 }
  0x43   :  { %1135 = shalt.err (!%p1132_p1)
}
  0x44   :  { %102 = dma.hbm_to_vmem [thread:$0]  %s1460_s9, 1024, %s97_s22, [#allocation12], %s1253_s23, %s1253_s23, %s1254_s24  }
  0x45   :  { %1236 = dma.done.wait [#allocation3], 256  }
  0x46   :  { %1237 = vsyncadd [#allocation3], 4294967040 }
  0x47   :  { %1238 = dma.done.wait [#allocation6], 1056  }
  0x48   :  { %1239 = vsyncadd [#allocation6], 4294966240 }
  0x49   :  { %1240 = dma.done.wait [#allocation9], 3072  }
  0x4a   :  { %1241 = vsyncadd [#allocation9], 4294964224 }
  0x4b   :  { %1242 = dma.done.wait [#allocation12], 1024  }
  0x4c   :  { %1243 = vsyncadd [#allocation12], 4294966272  ;;  %v1258_v0 = vmov 0.0   ;;  %vm1259_vm0 = vmmov 0   ;;  %v976_v1 = vld [vmem:[#allocation7 + $0x38] sm:$0xff]   ;;  %v977_v2 = vld [vmem:[#allocation7 + $0x30] sm:$0xff]   ;;  %v360_v5 = vlaneseq }
  0x4d   :  { %895 = vmatprep.subr.bf16.mxu0 %v1258_v0  ;;  %911 = vmatprep.mubr.msk.bf16.mxu0 %vm1259_vm0, %v1258_v0  ;;  %v978_v3 = vld [vmem:[#allocation7 + $0x28] sm:$0xff]   ;;  %v979_v4 = vld [vmem:[#allocation7 + $0x20] sm:$0xff]   ;;  %v980_v6 = vld [vmem:[#allocation7 + $0x18] sm:$0xff]   ;;  %v1260_v58 = vmov 0   ;;  %s1261_s17 = smov [#allocation14]  }
  0x4e   :  { %915 = vmatprep.subr.bf16.mxu1 %v1258_v0  ;;  %931 = vmatprep.mubr.msk.bf16.mxu1 %vm1259_vm0, %v1258_v0  ;;  %v981_v7 = vld [vmem:[#allocation7 + $0x10] sm:$0xff]   ;;  %v1386_v9 = vshrl.u32 %v360_v5, 7  ;;  %v799_v10 = vld [vmem:[#allocation5] ss:$0 sm:$0xff]  ;;  %v982_v11 = vld [vmem:[#allocation7 + $0x8] sm:$0xff]   ;;  %s743_s7 = sshll.u32 %s1261_s17, 4  ;;  %s744_s7 = int_to_ptr.vmem [resolvable:$true] %s743_s7 }
  0x4f   :  { %896 = vmatpush3.bf16.msra.mxu0 %v976_v1  ;;  %v122_v8 = vld [vmem:[%s1451_s0] sm:$0xff]  ;;  %v800_v14 = vld [vmem:[#allocation5 + $0x1] ss:$0 sm:$0xff]  ;;  %v983_v15 = vld [vmem:[#allocation7] sm:$0xff]   ;;  %975 = vset.pattern.permute.xlu0 %v1260_v58  ;;  %s1136_s18 = scalar_lea.vmem %s744_s7, 128  ;;  %p1141_p3 = scmp.lt.s32.totalorder %s744_s7, %s744_s7 }
  0x50   :  { %897 = vmatprep.subr.bf16.mxu0 %v1258_v0  ;;  %v128_v12 = vmul.f32 %v799_v10, %v122_v8  ;;  %v366_v13 = vsub.s32 1, %v1386_v9  ;;  %v984_v17 = vld [vmem:[#allocation10 + $0x78] sm:$0xff]   ;;  %v358_v19 = vld [vmem:[%s1455_s4] ss:$2 sm:$0x3]  ;;  %v1003_v34 = vld [vmem:[#allocation8 + $0x20] sm:$0xff]   ;;  %p1137_p2 = scmp.ne.s32.totalorder %s744_s7, %s1136_s18  ;;  %p1142_p4 = scmp.lt.s32.totalorder %s1136_s18, %s1136_s18 }
  0x51   :  { %v357_v18 = vld [vmem:[#allocation2 + $0x8] sm:$0xff]  ;;  %v819_v21 = vld [vmem:[%s1455_s4 + $0x1] ss:$2 sm:$0x3]  ;;  %v990_v36 = vld [vmem:[#allocation10 + $0x60] sm:$0xff]   ;;  %v362_v41 = vsub.s32 0, %v1386_v9 }
  0x52   :  { %v134_v16 = vadd.f32 %v800_v14, %v128_v12  ;;  %v367_v20 = vrot.slane %v358_v19, %v366_v13  ;;  %v1000_v22 = vld [vmem:[#allocation8 + $0x38] sm:$0xff]   ;;  %v382_v23 = vrot.slane %v819_v21, %v366_v13  ;;  %v1001_v25 = vld [vmem:[#allocation8 + $0x30] sm:$0xff]   ;;  %v1002_v32 = vld [vmem:[#allocation8 + $0x28] sm:$0xff]   ;;  %p1143_p5 = por %p1142_p4, %p1141_p3 }
  0x53   :  { %898 = vmatpush3.bf16.msra.mxu0 %v977_v2  ;;  %916 = vmatpush3.bf16.msra.mxu1 %v1000_v22  ;;  %v985_v27 = vld [vmem:[#allocation10 + $0x38] sm:$0xff]   ;;  %v986_v29 = vld [vmem:[#allocation10 + $0x70] sm:$0xff]   ;;  %v988_v33 = vld [vmem:[#allocation10 + $0x68] sm:$0xff]   ;;  %v363_v44 = vrot.slane %v358_v19, %v362_v41  ;;  %v378_v48 = vrot.slane %v819_v21, %v362_v41 }
  0x54   :  { %899 = vmatprep.subr.bf16.mxu0 %v1258_v0  ;;  %v371_v24 = vmul.f32 %v367_v20, %v357_v18  ;;  %v135_v26 = vpack.c.bf16 %v134_v16, %v134_v16  ;;  %917 = vmatprep.subr.bf16.mxu1 %v1258_v0  ;;  %v987_v30 = vld [vmem:[#allocation10 + $0x30] sm:$0xff]   ;;  %v989_v35 = vld [vmem:[#allocation10 + $0x28] sm:$0xff]   ;;  %v1004_v37 = vld [vmem:[#allocation8 + $0x18] sm:$0xff]   ;;  %p1144_p6 = pnand %p1143_p5, %p1137_p2 }
  0x55   :  { %v991_v38 = vld [vmem:[#allocation10 + $0x20] sm:$0xff]   ;;  %v992_v39 = vld [vmem:[#allocation10 + $0x58] sm:$0xff]   ;;  %v1005_v40 = vld [vmem:[#allocation8 + $0x10] sm:$0xff]  }
  0x56   :  { %v386_v28 = vadd.f32 %v382_v23, %v371_v24  ;;  %v993_v42 = vld [vmem:[#allocation10 + $0x18] sm:$0xff]   ;;  %v994_v43 = vld [vmem:[#allocation10 + $0x50] sm:$0xff]   ;;  %v996_v47 = vld [vmem:[#allocation10 + $0x48] sm:$0xff]  }
  0x57   :  { %900 = vmatpush3.bf16.msra.mxu0 %v978_v3  ;;  %918 = vmatpush3.bf16.msra.mxu1 %v1001_v25  ;;  %v995_v45 = vld [vmem:[#allocation10 + $0x10] sm:$0xff]   ;;  %v997_v50 = vld [vmem:[#allocation10 + $0x8] sm:$0xff]   ;;  %v998_v51 = vld [vmem:[#allocation10 + $0x40] sm:$0xff]  }
  0x58   :  { %901 = vmatprep.subr.bf16.mxu0 %v1258_v0  ;;  %v388_v31 = vpack.c.bf16 %v386_v28, %v386_v28  ;;  %919 = vmatprep.subr.bf16.mxu1 %v1258_v0  ;;  %v356_v46 = vld [vmem:[#allocation2] sm:$0xff]  ;;  %v999_v53 = vld [vmem:[#allocation10] sm:$0xff]   ;;  %v1008_v2 = vld [vmem:[#allocation11 + $0x38] sm:$0xff]  }
  0x59   :  { %v370_v49 = vmul.f32 %v363_v44, %v356_v46  ;;  %v1006_v55 = vld [vmem:[#allocation8 + $0x8] sm:$0xff]   ;;  %v1007_v56 = vld [vmem:[#allocation8] sm:$0xff]   ;;  %v1009_v5 = vld [vmem:[#allocation11 + $0x30] sm:$0xff]  }
  0x5a   :  { %v712_v57 = vld [vmem:[%s1453_s2] sm:$0xff]  ;;  %v1012_v8 = vld [vmem:[#allocation11 + $0x18] sm:$0xff]   ;;  %v1015_v12 = vld [vmem:[#allocation11] sm:$0xff]  }
  0x5b   :  { %902 = vmatpush3.bf16.msra.mxu0 %v979_v4  ;;  %920 = vmatpush3.bf16.msra.mxu1 %v1002_v32  ;;  %v385_v52 = vadd.f32 %v378_v48, %v370_v49  ;;  %v801_v59 = vld [vmem:[%s1456_s5] ss:$0 sm:$0xff]  ;;  %v1013_v9 = vld [vmem:[#allocation11 + $0x10] sm:$0xff]   ;;  %v810_v21 = vld [vmem:[%s1456_s5 + $0x1] ss:$0 sm:$0xff] }
  0x5c   :  { %903 = vmatprep.subr.bf16.mxu0 %v1258_v0  ;;  %921 = vmatprep.subr.bf16.mxu1 %v1258_v0  ;;  %v1014_v10 = vld [vmem:[#allocation11 + $0x8] sm:$0xff]   ;;  %v820_v13 = vld [vmem:[%s1456_s5 + $0x2] ss:$0 sm:$0xff] }
  0x5d   :  { %v387_v54 = vpack.c.bf16 %v385_v52, %v385_v52  ;;  %715 = vperm.xlu0 %975, %v712_v57  }
  0x5f   :  { %904 = vmatpush3.bf16.msra.mxu0 %v980_v6  ;;  %922 = vmatpush3.bf16.msra.mxu1 %v1003_v34  ;;  %v1010_v6 = vld [vmem:[#allocation11 + $0x28] sm:$0xff]  }
  0x60   :  { %905 = vmatprep.subr.bf16.mxu0 %v1258_v0  ;;  %923 = vmatprep.subr.bf16.mxu1 %v1258_v0 }
  0x63   :  { %906 = vmatpush3.bf16.msra.mxu0 %v981_v7  ;;  %924 = vmatpush3.bf16.msra.mxu1 %v1004_v37  ;;  %v1011_v7 = vld [vmem:[#allocation11 + $0x20] sm:$0xff]  }
  0x64   :  { %907 = vmatprep.subr.bf16.mxu0 %v1258_v0  ;;  %925 = vmatprep.subr.bf16.mxu1 %v1258_v0 }
  0x67   :  { %908 = vmatpush3.bf16.msra.mxu0 %v982_v11  ;;  %926 = vmatpush3.bf16.msra.mxu1 %v1005_v40 }
  0x68   :  { %909 = vmatprep.subr.bf16.mxu0 %v1258_v0  ;;  %927 = vmatprep.subr.bf16.mxu1 %v1258_v0 }
  0x6b   :  { %910 = vmatpush3.bf16.msra.mxu0 %v983_v15  ;;  %928 = vmatpush3.bf16.msra.mxu1 %v1006_v55 }
  0x6c   :  { %864 = vmatprep.subr.bf16.mxu0 %v984_v17  ;;  %929 = vmatprep.subr.bf16.mxu1 %v1258_v0 }
  0x6e   :  { %912 = vmatmul.mubr.bf16.vlgmr.msra.gmra.mxu0 %v135_v26 }
  0x6f   :  { %865 = vmatpush3.bf16.msra.mxu0 %v985_v27  ;;  %554 = vmatprep.mubr.bf16.mxu0 %v388_v31 }
  0x70   :  { %866 = vmatprep.subr.bf16.mxu0 %v986_v29  ;;  %930 = vmatpush3.bf16.msra.mxu1 %v1007_v56 }
  0x71   :  { %935 = vmatprep.subr.bf16.mxu1 %v1258_v0 }
  0x73   :  { %867 = vmatpush3.bf16.msra.mxu0 %v987_v30 }
  0x74   :  { %868 = vmatprep.subr.bf16.mxu0 %v988_v33 }
  0x77   :  { %869 = vmatpush3.bf16.msra.mxu0 %v989_v35 }
  0x78   :  { %870 = vmatprep.subr.bf16.mxu0 %v990_v36 }
  0x7b   :  { %871 = vmatpush3.bf16.msra.mxu0 %v991_v38 }
  0x7c   :  { %872 = vmatprep.subr.bf16.mxu0 %v992_v39 }
  0x7f   :  { %873 = vmatpush3.bf16.msra.mxu0 %v993_v42 }
  0x80   :  { %874 = vmatprep.subr.bf16.mxu0 %v994_v43 }
  0x83   :  { %875 = vmatpush3.bf16.msra.mxu0 %v995_v45 }
  0x84   :  { %876 = vmatprep.subr.bf16.mxu0 %v996_v47 }
  0x87   :  { %877 = vmatpush3.bf16.msra.mxu0 %v997_v50 }
  0x88   :  { %878 = vmatprep.subr.bf16.mxu0 %v998_v51 }
  0x8b   :  { %879 = vmatpush3.bf16.msra.mxu0 %v999_v53 }
  0x8e   :  { %555 = vmatmul.mubr.bf16.vlgmr.msra.gmra.mxu0 %v387_v54 }
 0x12e   :  { %v239_v60 = vpop.f32.mrf.mxu0 }
 0x12f   :  { %v240_v61 = vadd.f32 %v801_v59, %v239_v60 }
 0x130   :  { %v913_v62 = vpop.f32.mrf.mxu0 }
 0x131   :  { %v245_v63 = vmax.f32 %v240_v61, 0.0 }
 0x132   :  { %v242_v1 = vpop.f32.mrf.mxu0 }
 0x133   :  { %v246_v3 = vpack.c.bf16 %v245_v63, %v245_v63 }
 0x134   :  { %v914_v4 = vpop.f32.mrf.mxu0 }
 0x135   :  { %932 = vmatmul.mubr.bf16.vlgmr.msra.gmra.mxu1 %v246_v3 }
 0x136   :  { %936 = vmatpush3.bf16.msra.mxu1 %v1008_v2  ;;  %951 = vmatprep.mubr.msk.bf16.mxu1 %vm1259_vm0, %v1258_v0 }
 0x137   :  { %937 = vmatprep.subr.bf16.mxu1 %v1258_v0 }
 0x13a   :  { %938 = vmatpush3.bf16.msra.mxu1 %v1009_v5 }
 0x13b   :  { %939 = vmatprep.subr.bf16.mxu1 %v1258_v0 }
 0x13e   :  { %940 = vmatpush3.bf16.msra.mxu1 %v1010_v6 }
 0x13f   :  { %941 = vmatprep.subr.bf16.mxu1 %v1258_v0 }
 0x142   :  { %942 = vmatpush3.bf16.msra.mxu1 %v1011_v7 }
 0x143   :  { %943 = vmatprep.subr.bf16.mxu1 %v1258_v0 }
 0x146   :  { %944 = vmatpush3.bf16.msra.mxu1 %v1012_v8 }
 0x147   :  { %945 = vmatprep.subr.bf16.mxu1 %v1258_v0 }
 0x14a   :  { %946 = vmatpush3.bf16.msra.mxu1 %v1013_v9 }
 0x14b   :  { %947 = vmatprep.subr.bf16.mxu1 %v1258_v0 }
 0x14e   :  { %v880_v11 = vpop.f32.mrf.mxu0  ;;  %948 = vmatpush3.bf16.msra.mxu1 %v1014_v10 }
 0x14f   :  { %949 = vmatprep.subr.bf16.mxu1 %v1258_v0 }
 0x150   :  { %v881_v14 = vpop.f32.mrf.mxu0 }
 0x151   :  { %v882_v15 = vadd.f32 %v881_v14, %v880_v11 }
 0x152   :  { %v883_v16 = vpop.f32.mrf.mxu0  ;;  %950 = vmatpush3.bf16.msra.mxu1 %v1015_v12 }
 0x153   :  { %v557_v17 = vadd.f32 %v882_v15, %v820_v13 }
 0x154   :  { %v884_v18 = vpop.f32.mrf.mxu0 }
 0x155   :  { %v562_v19 = vmax.f32 %v557_v17, 0.0 }
 0x157   :  { %v563_v20 = vpack.c.bf16 %v562_v19, %v562_v19 }
 0x159   :  { %952 = vmatmul.mubr.bf16.vlgmr.msra.gmra.mxu1 %v563_v20 }
 0x1f5   :  { %v350_v0 = vpop.f32.mrf.mxu1 }
 0x1f6   :  { %v1428_v22 = vadd.f32 %v810_v21, %v350_v0 }
 0x1f7   :  { %v933_v23 = vpop.f32.mrf.mxu1 }
 0x1f8   :  { %723 = vst [vmem:[#allocation14] sm:$0xff] %v1428_v22 }
 0x1f9   :  { %v353_v24 = vpop.f32.mrf.mxu1 }
 0x1fa   :  { %1147 = shalt.err (!%p1144_p6)
}
 0x1fb   :  { %746 = dma.vmem_to_hbm [thread:$0]  %s744_s7, 128, %s1462_s11, [#allocation15]   ;;  %v934_v25 = vpop.f32.mrf.mxu1  ;;  %v837_v26 = vld [vmem:[%s1456_s5 + $0x3] ss:$0 sm:$0xff] }
 0x1fc   :  { %s1262_s22 = smov [#allocation16]  }
 0x1fd   :  { %s753_s25 = sshll.u32 %s1262_s22, 4  ;;  %s754_s25 = int_to_ptr.vmem [resolvable:$true] %s753_s25 }
 0x1fe   :  { %s1156_s6 = scalar_lea.vmem %s754_s25, 128  ;;  %p1161_p8 = scmp.lt.s32.totalorder %s754_s25, %s754_s25 }
 0x1ff   :  { %p1157_p7 = scmp.ne.s32.totalorder %s754_s25, %s1156_s6  ;;  %p1162_p9 = scmp.lt.s32.totalorder %s1156_s6, %s1156_s6 }
 0x201   :  { %p1163_p10 = por %p1162_p9, %p1161_p8 }
 0x203   :  { %p1164_p11 = pnand %p1163_p10, %p1157_p7 }
 0x219   :  { %v667_v27 = vpop.f32.mrf.mxu1 }
 0x21a   :  { %v668_v28 = vadd.f32 %v837_v26, %v667_v27 }
 0x21b   :  { %v953_v29 = vpop.f32.mrf.mxu1 }
 0x21c   :  { %v673_v30 = vmul.f32 0.63661975, %v668_v28  ;;  %724 = vst [vmem:[#allocation16] sm:$0xff] %v668_v28 }
 0x21d   :  { %v670_v31 = vpop.f32.mrf.mxu1 }
 0x21e   :  { %1167 = shalt.err (!%p1164_p11)
}
 0x21f   :  { %756 = dma.vmem_to_hbm [thread:$0]  %s754_s25, 128, %s1463_s12, [#allocation15]   ;;  %vm674_vm1 = vcmp.ge.f32.partialorder %v673_v30, 0.0  ;;  %v1263_v32 = vmov -0.5   ;;  %v954_v34 = vpop.f32.mrf.mxu1  ;;  %v716_v61 = vpop.permute.xlu0 %715  ;;  %v1264_v1 = vmov -1.0  }
 0x220   :  { %v675_v33 = vsel %vm674_vm1, 0.5, %v1263_v32  ;;  %s1265_s5 = smov [#allocation17]   ;;  %v719_v6 = vmul.f32 %v716_v61, %v1428_v22  ;;  %s1266_s8 = smov [#allocation13]  }
 0x221   :  { %v676_v35 = vadd.f32 %v675_v33, %v673_v30  ;;  %s763_s12 = sshll.u32 %s1265_s5, 4  ;;  %s733_s9 = sshll.u32 %s1266_s8, 4  ;;  %s764_s12 = int_to_ptr.vmem [resolvable:$true] %s763_s12  ;;  %s734_s9 = int_to_ptr.vmem [resolvable:$true] %s733_s9 }
 0x222   :  { %s1267_s23 = smov [#allocation19]   ;;  %s1176_s24 = scalar_lea.vmem %s764_s12, 128 }
 0x223   :  { %v955_v36 = vtrunc.f32 %v676_v35  ;;  %s773_s0 = sshll.u32 %s1267_s23, 4  ;;  %p1177_p12 = scmp.ne.s32.totalorder %s764_s12, %s1176_s24  ;;  %s774_s0 = int_to_ptr.vmem [resolvable:$true] %s773_s0 }
 0x224   :  { %p1181_p13 = scmp.lt.s32.totalorder %s764_s12, %s764_s12  ;;  %p1182_p0 = scmp.lt.s32.totalorder %s1176_s24, %s1176_s24 }
 0x225   :  { %v956_v37 = vcvt.f32.s32 %v955_v36 }
 0x226   :  { %p1183_p1 = por %p1182_p0, %p1181_p13 }
 0x227   :  { %v678_v38 = vcvt.s32.f32 %v956_v37  ;;  %v704_v50 = vadd.s32 1, %v956_v37  ;;  %v701_v56 = vand.u32 2, %v956_v37  ;;  %v699_v59 = vand.u32 1, %v956_v37 }
 0x228   :  { %p1184_p2 = pnand %p1183_p1, %p1177_p12 }
 0x229   :  { %v679_v39 = vmul.f32 1.5707964, %v678_v38  ;;  %v681_v41 = vmul.f32 -4.371139e-08, %v678_v38  ;;  %v705_v55 = vand.u32 2, %v704_v50  ;;  %vm702_vm3 = vcmp.eq.s32.totalorder %v701_v56, 0 }
 0x22a   :  { %vm700_vm4 = vcmp.eq.s32.totalorder %v699_v59, 1  ;;  %v703_v4 = vsel %vm702_vm3, 1.0, %v1264_v1 }
 0x22b   :  { %v680_v40 = vsub.f32 %v668_v28, %v679_v39  ;;  %vm706_vm2 = vcmp.eq.s32.totalorder %v705_v55, 0 }
 0x22c   :  { %v707_v2 = vsel %vm706_vm2, 1.0, %v1264_v1 }
 0x22d   :  { %v682_v42 = vsub.f32 %v680_v40, %v681_v41 }
 0x22f   :  { %v683_v43 = vmul.f32 %v682_v42, %v682_v42 }
 0x231   :  { %v685_v44 = vmul.f32 -0.00019515296, %v683_v43  ;;  %v691_v45 = vmul.f32 2.4433157e-05, %v683_v43  ;;  %v684_v53 = vmul.f32 %v683_v43, %v682_v42 }
 0x233   :  { %v686_v46 = vadd.f32 0.008332161, %v685_v44  ;;  %v692_v47 = vadd.f32 -0.0013887316, %v691_v45 }
 0x235   :  { %v687_v48 = vmul.f32 %v686_v46, %v683_v43  ;;  %v693_v49 = vmul.f32 %v692_v47, %v683_v43 }
 0x237   :  { %v688_v51 = vadd.f32 -0.16666655, %v687_v48  ;;  %v694_v52 = vadd.f32 0.041666646, %v693_v49 }
 0x239   :  { %v695_v54 = vmul.f32 %v694_v52, %v683_v43  ;;  %v689_v57 = vmul.f32 %v688_v51, %v684_v53 }
 0x23b   :  { %v696_v58 = vadd.f32 -0.5, %v695_v54  ;;  %v690_v62 = vadd.f32 %v689_v57, %v682_v42 }
 0x23d   :  { %v697_v60 = vmul.f32 %v696_v58, %v683_v43 }
 0x23f   :  { %v698_v63 = vadd.f32 1.0, %v697_v60 }
 0x241   :  { %v710_v3 = vsel %vm700_vm4, %v690_v62, %v698_v63  ;;  %v708_v5 = vsel %vm700_vm4, %v698_v63, %v690_v62 }
 0x242   :  { %v711_v7 = vmul.f32 %v710_v3, %v707_v2  ;;  %v709_v8 = vmul.f32 %v708_v5, %v703_v4 }
 0x244   :  { %v718_v9 = vmul.f32 %v711_v7, %v1428_v22  ;;  %v720_v10 = vmul.f32 %v719_v6, %v709_v8 }
 0x246   :  { %721 = vst [vmem:[#allocation17] sm:$0xff] %v718_v9  ;;  %725 = vst [vmem:[#allocation13] sm:$0xff] %v718_v9 }
 0x247   :  { %726 = vst [vmem:[#allocation13 + $0x8] sm:$0xff] %v720_v10  ;;  %722 = vst [vmem:[#allocation19] sm:$0xff] %v720_v10 }
 0x248   :  { %1187 = shalt.err (!%p1184_p2)
}
 0x249   :  { %766 = dma.vmem_to_hbm [thread:$0]  %s764_s12, 128, %s1464_s13, [#allocation18]  }
 0x24a   :  { %s1196_s27 = scalar_lea.vmem %s734_s9, 256  ;;  %p1201_p4 = scmp.lt.s32.totalorder %s734_s9, %s734_s9 }
 0x24b   :  { %p1197_p3 = scmp.ne.s32.totalorder %s734_s9, %s1196_s27  ;;  %p1202_p5 = scmp.lt.s32.totalorder %s1196_s27, %s1196_s27 }
 0x24d   :  { %p1203_p6 = por %p1202_p5, %p1201_p4 }
 0x24f   :  { %p1204_p7 = pnand %p1203_p6, %p1197_p3 }
 0x251   :  { %1207 = shalt.err (!%p1204_p7)
}
 0x252   :  { %736 = dma.vmem_to_hbm [thread:$0]  %s734_s9, 256, %s1461_s10, [#allocation4]  }
 0x253   :  { %s1216_s2 = scalar_lea.vmem %s774_s0, 128  ;;  %p1221_p9 = scmp.lt.s32.totalorder %s774_s0, %s774_s0 }
 0x254   :  { %p1217_p8 = scmp.ne.s32.totalorder %s774_s0, %s1216_s2  ;;  %p1222_p10 = scmp.lt.s32.totalorder %s1216_s2, %s1216_s2 }
 0x256   :  { %p1223_p11 = por %p1222_p10, %p1221_p9 }
 0x258   :  { %p1224_p12 = pnand %p1223_p11, %p1217_p8 }
 0x25a   :  { %1227 = shalt.err (!%p1224_p12)
}
 0x25b   :  { %776 = dma.vmem_to_hbm [thread:$0]  %s774_s0, 128, %s1465_s14, [#allocation18]  }
 0x25c   :  { %1244 = dma.done.wait [#allocation4], 256  }
 0x25d   :  { %1245 = vsyncadd [#allocation4], 4294967040 }
 0x25e   :  { %1246 = dma.done.wait [#allocation15], 256  }
 0x25f   :  { %1247 = vsyncadd [#allocation15], 4294967040 }
 0x260   :  { %1248 = dma.done.wait [#allocation18], 256  }
 0x261   :  { %1249 = vsyncadd [#allocation18], 4294967040 }
 0x262   :  { %792 = vsyncpa [#allocation3], 1 }
 0x263   :  { %793 = vsyncpa [#allocation6], 1 }
 0x264   :  { %794 = vsyncpa [#allocation9], 1 }
 0x265   :  { %795 = vsyncpa [#allocation12], 1 }
 0x266   :  { %796 = vsyncpa [#allocation4], 1 }
 0x267   :  { %797 = vsyncpa [#allocation15], 1 }
 0x268   :  { %798 = vsyncpa [#allocation18], 1 }

</bundles_post_ra>
